<compile_context>
chip_gen: v7x
topology: tpu7x:2x2x1
jax: 0.10.0
libtpu: 0.0.40
codegen_flags: <defaults>
</compile_context>

<pallas_src>
import functools

import jax
import jax.numpy as jnp
from jax.experimental import pallas as pl
from jax.experimental.pallas import tpu as pltpu


# Inner-loop window: 9 vregs, multiple of lcm(3, 128) = 384 so atoms (groups of
# 3 consecutive flat elements) never straddle a chunk boundary.
_CHUNK = 1152


# ----------------------------------------------------------------------------
# Hot path: D == 3, flat lane-dense presentation (no wrapper transpose).
# ----------------------------------------------------------------------------
def _l2mae_flat_kernel(x_ref, y_ref, o_ref, *, total_len, tile, chunk):
    """One grid step over a (1, tile) window of the flat (1, 3N) inputs.

    Emits the partial sum of per-atom L2 norms for this block into a single
    lane/sublane-aligned (1, 8, 128) output tile (value broadcast; wrapper
    reads [j, 0, 0]).
    """
    j = pl.program_id(0)
    n_chunks = tile // chunk

    # Valid-element limit for this block.  Interior blocks have limit >= tile,
    # so the bound check inside the loop is uniformly true there and costs one
    # fused compare per vreg (review item 2: no separate masking pass).
    limit = total_len - j * tile

    # Loop-invariant stride-3 lane mask (atom starts), hoisted out of the loop.
    lane = jax.lax.broadcasted_iota(jnp.int32, (1, chunk - 2), 1)
    keep3 = (lane % 3) == 0

    def body(c, acc):
        off = pl.multiple_of(c * chunk, 128)
        xv = x_ref[:, pl.ds(off, chunk)].astype(jnp.float32)
        yv = y_ref[:, pl.ds(off, chunk)].astype(jnp.float32)
        d = xv - yv
        sq = d * d
        # Per-atom squared norm: sum of 3 consecutive lanes; valid at lanes
        # whose (block-local == global) index is a multiple of 3.
        s = sq[:, : chunk - 2] + sq[:, 1 : chunk - 1] + sq[:, 2:chunk]
        t = jnp.sqrt(s)
        thresh = limit - off  # scalar; tail bound check fused with keep3
        keep = keep3 & (lane < thresh)
        # NOTE: jnp.where (select), NOT multiply-by-mask -- the tail of the
        # last block is uninitialized VMEM and may contain inf/NaN.
        return acc + jnp.where(keep, t, 0.0)

    acc = jax.lax.fori_loop(
        0, n_chunks, body, jnp.zeros((1, chunk - 2), jnp.float32))
    partial = jnp.sum(acc)
    # Single aligned store of this block's partial sum (review item 7).
    o_ref[...] = jnp.broadcast_to(partial, o_ref.shape)


def _flat_sizes():
    """(auto tile, vmem_limit_bytes) for the flat kernel, gated by chip VMEM."""
    # A (1, tile) block costs ~32 B of VMEM per element (8-sublane padding of a
    # 32-bit container) regardless of input dtype, since the kernel upcasts to
    # f32 (review item 6).
    try:
        vmem_cap = pltpu.get_tpu_info().vmem_capacity_bytes
    except Exception:  # conservative default if the query is unavailable
        vmem_cap = 64 * 1024 * 1024
    if vmem_cap >= 100 * 1024 * 1024:   # v5e / v6e: 128 MiB physical VMEM
        buf_budget = 40 * 1024 * 1024   # 2 operands x 2 pipeline buffers
        vmem_limit = 64 * 1024 * 1024   # review item 4
    else:                               # v7x: 64 MiB physical VMEM per core
        buf_budget = 18 * 1024 * 1024
        vmem_limit = 32 * 1024 * 1024   # review: do NOT apply the v6e bump
    tile = buf_budget // (2 * 2 * 32)
    tile = max(_CHUNK, (tile // _CHUNK) * _CHUNK)
    return tile, vmem_limit


def _flat_total(inp: jax.Array, target: jax.Array) -> jax.Array:
    """Sum of per-atom L2 norms for D == 3 via the flat lane-dense kernel."""
    total_len = inp.size                      # 3 * num_atoms
    x = inp.reshape(1, total_len)             # free, contiguous reshape
    y = target.reshape(1, total_len)

    tile_auto, vmem_limit = _flat_sizes()
    # At least two (roughly balanced) blocks so "parallel" can shard across
    # v7x's two TensorCores (review item 5); keep tile a multiple of _CHUNK.
    half = pl.cdiv(total_len, 2)
    half_r = pl.cdiv(half, _CHUNK) * _CHUNK
    tile = max(_CHUNK, min(tile_auto, half_r))
    num_blocks = pl.cdiv(total_len, tile)

    itemsize = jnp.dtype(inp.dtype).itemsize
    cost = pl.CostEstimate(
        flops=8 * total_len,
        transcendentals=total_len,
        bytes_accessed=2 * total_len * itemsize + num_blocks * 8 * 128 * 4,
    )

    partials = pl.pallas_call(
        functools.partial(_l2mae_flat_kernel,
                          total_len=total_len, tile=tile, chunk=_CHUNK),
        out_shape=jax.ShapeDtypeStruct((num_blocks, 8, 128), jnp.float32),
        grid=(num_blocks,),
        in_specs=[
            pl.BlockSpec((1, tile), lambda j: (0, j)),
            pl.BlockSpec((1, tile), lambda j: (0, j)),
        ],
        out_specs=pl.BlockSpec((1, 8, 128), lambda j: (j, 0, 0)),
        compiler_params=pltpu.CompilerParams(
            dimension_semantics=("parallel",),
            vmem_limit_bytes=vmem_limit,
        ),
        cost_estimate=cost,
    )(x, y)
    return jnp.sum(partials[:, 0, 0])


# ----------------------------------------------------------------------------
# Fallback: generic D (or tiny inputs) via the lane-dense (D, N) presentation.
# The wrapper transpose is irrelevant at the sizes this path is used for.
# TODO(synk): extend the flat in-kernel stride-D reduction to D != 3 so large
# inputs with other feature sizes also skip the transpose.
# ----------------------------------------------------------------------------
def _l2mae_tn_kernel(x_ref, y_ref, o_ref, *, n_cols):
    j = pl.program_id(0)
    tile_n = x_ref.shape[1]
    diff = x_ref[...].astype(jnp.float32) - y_ref[...].astype(jnp.float32)
    sq = jnp.sum(diff * diff, axis=0, keepdims=True)            # (1, tile_n)
    col = j * tile_n + jax.lax.broadcasted_iota(jnp.int32, (1, tile_n), 1)
    dist = jnp.where(col < n_cols, jnp.sqrt(sq), 0.0)
    o_ref[...] = jnp.broadcast_to(jnp.sum(dist), o_ref.shape)   # single store


def _auto_tile_cols(d: int, itemsize: int) -> int:
    """Lane tile giving ~4 MiB of (sublane-padded) VMEM per input block."""
    d_pad = ((d + 7) // 8) * 8
    itemsize = max(itemsize, 4)        # kernel upcasts to f32 (review item 6)
    cols = (4 * 1024 * 1024) // (d_pad * itemsize)
    return max(128, (cols // 128) * 128)


def _transposed_total(inp: jax.Array, target: jax.Array) -> jax.Array:
    d = inp.shape[-1]
    x = inp.reshape(-1, d).T
    y = target.reshape(-1, d).T
    n = x.shape[1]
    tile_n = _auto_tile_cols(d, jnp.dtype(inp.dtype).itemsize)
    if n <= tile_n:
        tile_n = n                      # single full-extent block
    num_blocks = pl.cdiv(n, tile_n)

    partials = pl.pallas_call(
        functools.partial(_l2mae_tn_kernel, n_cols=n),
        out_shape=jax.ShapeDtypeStruct((num_blocks, 8, 128), jnp.float32),
        grid=(num_blocks,),
        in_specs=[
            pl.BlockSpec((d, tile_n), lambda j: (0, j)),
            pl.BlockSpec((d, tile_n), lambda j: (0, j)),
        ],
        out_specs=pl.BlockSpec((1, 8, 128), lambda j: (j, 0, 0)),
        compiler_params=pltpu.CompilerParams(
            dimension_semantics=("parallel",),
            vmem_limit_bytes=32 * 1024 * 1024,
        ),
    )(x, y)
    return jnp.sum(partials[:, 0, 0])


# ----------------------------------------------------------------------------
# Public wrapper (matches torch L2MAELoss.forward).
# ----------------------------------------------------------------------------
def l2mae_loss(inp: jax.Array, target: jax.Array,
               reduction: str = "mean") -> jax.Array:
    assert reduction in ("mean", "sum")
    assert inp.shape == target.shape
    d = inp.shape[-1]
    num_rows = inp.size // d

    if d == 3 and inp.size >= 2 * _CHUNK:
        total = _flat_total(inp, target)          # hot path, no transpose
    else:
        total = _transposed_total(inp, target)    # generic / tiny fallback

    if reduction == "mean":
        total = total / jnp.float32(num_rows)
    return total.astype(inp.dtype)


if __name__ == "__main__":
    key = jax.random.PRNGKey(0)
    k1, k2, k3, k4, k5, k6, k7, k8 = jax.random.split(key, 8)

    def _ref(x, y, red):
        dists = jnp.linalg.norm(x - y, axis=-1)
        return jnp.mean(dists) if red == "mean" else jnp.sum(dists)

    # 1) Hot path: per-atom forces, multi-block grid + masked partial block
    #    (L = 12288 -> tile 6912, 2 blocks, last block partial, 6 chunks each).
    a1 = jax.random.normal(k1, (4096, 3), dtype=jnp.float32)
    b1 = jax.random.normal(k2, (4096, 3), dtype=jnp.float32)
    m1 = jax.block_until_ready(l2mae_loss(a1, b1, reduction="mean"))
    s1 = jax.block_until_ready(l2mae_loss(a1, b1, reduction="sum"))
    assert jnp.allclose(m1, _ref(a1, b1, "mean"), rtol=3e-5, atol=1e-4), (
        m1, _ref(a1, b1, "mean"))
    assert jnp.allclose(s1, _ref(a1, b1, "sum"), rtol=3e-5, atol=1e-3), (
        s1, _ref(a1, b1, "sum"))

    # 2) Tiny typical input -> fallback kernel.
    a2 = jax.random.normal(k3, (50, 3), dtype=jnp.float32)
    b2 = jax.random.normal(k4, (50, 3), dtype=jnp.float32)
    m2 = jax.block_until_ready(l2mae_loss(a2, b2, reduction="mean"))
    s2 = jax.block_until_ready(l2mae_loss(a2, b2, reduction="sum"))
    assert jnp.allclose(m2, _ref(a2, b2, "mean"), rtol=3e-5, atol=1e-4)
    assert jnp.allclose(s2, _ref(a2, b2, "sum"), rtol=3e-5, atol=1e-4)

    # 3) Batched input (leading dims folded), still small -> fallback kernel.
    a3 = jax.random.normal(k5, (4, 75, 3), dtype=jnp.float32)
    b3 = jax.random.normal(k6, (4, 75, 3), dtype=jnp.float32)
    m3 = jax.block_until_ready(l2mae_loss(a3, b3, reduction="mean"))
    assert jnp.allclose(m3, _ref(a3, b3, "mean"), rtol=3e-5, atol=1e-4)

    # 4) Atypical feature size (D != 3) -> generic fallback kernel.
    a4 = jax.random.normal(k7, (64, 5), dtype=jnp.float32)
    b4 = jax.random.normal(k8, (64, 5), dtype=jnp.float32)
    m4 = jax.block_until_ready(l2mae_loss(a4, b4, reduction="mean"))
    assert jnp.allclose(m4, _ref(a4, b4, "mean"), rtol=3e-5, atol=1e-4)

    print("KERNEL_OK")
</pallas_src>

<mosaic_0001>
module attributes {stable_mosaic.version = 11 : i64} {
  func.func @_l2mae_flat_kernel(%arg0: i32, %arg1: memref<1x6912xf32, #tpu.memory_space<vmem>>, %arg2: memref<1x6912xf32, #tpu.memory_space<vmem>>, %arg3: memref<1x8x128xf32, #tpu.memory_space<vmem>>) attributes {dimension_semantics = [#tpu.dimension_semantics<parallel>], iteration_bounds = array<i64: 2>, scalar_prefetch = 0 : i64, scratch_operands = 0 : i64, tpu.core_type = #tpu.core_type<tc>, window_params = [{transform_indices = @transform_0, window_bounds = array<i64: 1, 6912>}, {transform_indices = @transform_1, window_bounds = array<i64: 1, 6912>}, {transform_indices = @transform_2, window_bounds = array<i64: 1, 8, 128>}]} {
    %c6912_i32 = arith.constant 6912 : i32
    %0 = arith.muli %arg0, %c6912_i32 : i32
    %c12288_i32 = arith.constant 12288 : i32
    %1 = arith.subi %c12288_i32, %0 : i32
    %2 = tpu.iota {dimensions = array<i32: 1>} : vector<1x1150xi32>
    %c3_i32 = arith.constant 3 : i32
    %c0_i32 = arith.constant 0 : i32
    %3 = arith.cmpi eq, %c3_i32, %c0_i32 : i32
    %c1_i32 = arith.constant 1 : i32
    %4 = arith.select %3, %c1_i32, %c3_i32 : i32
    %5 = vector.broadcast %4 : i32 to vector<1x1150xi32>
    %6 = arith.remsi %2, %5 : vector<1x1150xi32>
    %c0_i32_0 = arith.constant 0 : i32
    %7 = vector.broadcast %c0_i32_0 : i32 to vector<1x1150xi32>
    %8 = arith.cmpi ne, %6, %7 : vector<1x1150xi32>
    %c0_i32_1 = arith.constant 0 : i32
    %9 = vector.broadcast %c0_i32_1 : i32 to vector<1x1150xi32>
    %10 = arith.cmpi slt, %6, %9 : vector<1x1150xi32>
    %c0_i32_2 = arith.constant 0 : i32
    %11 = arith.cmpi slt, %4, %c0_i32_2 : i32
    %12 = vector.broadcast %11 : i1 to vector<1x1150xi1>
    %13 = vector.broadcast %12 : vector<1x1150xi1> to vector<1x1150xi1>
    %14 = arith.xori %10, %13 : vector<1x1150xi1>
    %15 = arith.andi %14, %8 : vector<1x1150xi1>
    %16 = vector.broadcast %4 : i32 to vector<1x1150xi32>
    %17 = arith.addi %6, %16 : vector<1x1150xi32>
    %18 = arith.select %15, %17, %6 : vector<1x1150xi1>, vector<1x1150xi32>
    %c0_i32_3 = arith.constant 0 : i32
    %19 = vector.broadcast %c0_i32_3 : i32 to vector<1x1150xi32>
    %20 = arith.cmpi eq, %18, %19 : vector<1x1150xi32>
    %cst = arith.constant 0.000000e+00 : f32
    %21 = vector.broadcast %cst : f32 to vector<1x1150xf32>
    %c0_i32_4 = arith.constant 0 : i32
    %c6_i32 = arith.constant 6 : i32
    %22 = arith.addi %c0_i32_4, %c6_i32 : i32
    %c1_i32_5 = arith.constant 1 : i32
    %23 = scf.for %arg4 = %c0_i32_4 to %22 step %c1_i32_5 iter_args(%arg5 = %21) -> (vector<1x1150xf32>)  : i32 {
      %c1152_i32 = arith.constant 1152 : i32
      %30 = arith.muli %arg4, %c1152_i32 : i32
      %31 = tpu.assume_multiple %30, 128 : i32
      %c0_10 = arith.constant 0 : index
      %32 = arith.index_cast %31 : i32 to index
      %33 = vector.load %arg1[%c0_10, %32] : memref<1x6912xf32, #tpu.memory_space<vmem>>, vector<1x1152xf32>
      %c0_11 = arith.constant 0 : index
      %34 = arith.index_cast %31 : i32 to index
      %35 = vector.load %arg2[%c0_11, %34] : memref<1x6912xf32, #tpu.memory_space<vmem>>, vector<1x1152xf32>
      %36 = arith.subf %33, %35 : vector<1x1152xf32>
      %37 = arith.mulf %36, %36 : vector<1x1152xf32>
      %38 = vector.extract_strided_slice %37 {offsets = [0, 0], sizes = [1, 1150], strides = [1, 1]} : vector<1x1152xf32> to vector<1x1150xf32>
      %39 = vector.extract_strided_slice %37 {offsets = [0, 1], sizes = [1, 1150], strides = [1, 1]} : vector<1x1152xf32> to vector<1x1150xf32>
      %40 = arith.addf %38, %39 : vector<1x1150xf32>
      %41 = vector.extract_strided_slice %37 {offsets = [0, 2], sizes = [1, 1150], strides = [1, 1]} : vector<1x1152xf32> to vector<1x1150xf32>
      %42 = arith.addf %40, %41 : vector<1x1150xf32>
      %43 = math.sqrt %42 : vector<1x1150xf32>
      %44 = arith.subi %1, %31 : i32
      %45 = vector.broadcast %44 : i32 to vector<1x1150xi32>
      %46 = arith.cmpi slt, %2, %45 : vector<1x1150xi32>
      %47 = arith.andi %20, %46 : vector<1x1150xi1>
      %cst_12 = arith.constant 0.000000e+00 : f32
      %48 = vector.broadcast %cst_12 : f32 to vector<1x1150xf32>
      %49 = arith.select %47, %43, %48 : vector<1x1150xi1>, vector<1x1150xf32>
      %50 = arith.addf %arg5, %49 : vector<1x1150xf32>
      scf.yield %50 : vector<1x1150xf32>
    }
    %c6_i32_6 = arith.constant 6 : i32
    %24 = vector.shape_cast %23 : vector<1x1150xf32> to vector<1x1x1150xf32>
    %cst_7 = arith.constant dense<0.000000e+00> : vector<1xf32>
    %25 = vector.multi_reduction <add>, %24, %cst_7 [1, 2] : vector<1x1x1150xf32> to vector<1xf32>
    %26 = vector.shape_cast %25 : vector<1xf32> to vector<1x1x1xf32>
    %27 = vector.extract %26[0, 0, 0] : f32 from vector<1x1x1xf32>
    %28 = vector.broadcast %27 : f32 to vector<1x8x128xf32>
    %c0 = arith.constant 0 : index
    %c0_8 = arith.constant 0 : index
    %c0_9 = arith.constant 0 : index
    %29 = vector.load %arg3[%c0, %c0_8, %c0_9] : memref<1x8x128xf32, #tpu.memory_space<vmem>>, vector<1x8x128xf32>
    tpu.vector_store %arg3[%c0, %c0_8, %c0_9], %28 {strides = array<i32>} : memref<1x8x128xf32, #tpu.memory_space<vmem>>, vector<1x8x128xf32>,
    return
  }
  func.func @transform_0(%arg0: i32) -> (i32, i32) {
    %c0_i32 = arith.constant 0 : i32
    %c0_i32_0 = arith.constant 0 : i32
    return %c0_i32, %arg0 : i32, i32
  }
  func.func @transform_1(%arg0: i32) -> (i32, i32) {
    %c0_i32 = arith.constant 0 : i32
    %c0_i32_0 = arith.constant 0 : i32
    return %c0_i32, %arg0 : i32, i32
  }
  func.func @transform_2(%arg0: i32) -> (i32, i32, i32) {
    %c0_i32 = arith.constant 0 : i32
    %c0_i32_0 = arith.constant 0 : i32
    %c0_i32_1 = arith.constant 0 : i32
    return %arg0, %c0_i32, %c0_i32_0 : i32, i32, i32
  }
}

</mosaic_0001>

<bundles_post_ra>
// kernel: tpu_custom_call.1
= control target key start
LH: loop header
LB: loop body
LE: loop exit
PB: predicated region body
PF: predicated region fallthrough
CT: control target
= control target key end

     0   :  { %7 = vsyncpa [#allocation3], 0  ;;  %s1661_s0 = inlined_call_operand.hbm [shape: f32[1,12288], index: 0, kind: input, shape index: {}]   ;;  %s1662_s1 = inlined_call_operand.hbm [shape: f32[1,12288], index: 1, kind: input, shape index: {}]   ;;  %s1663_s2 = inlined_call_operand.hbm [shape: f32[2,8,128], index: 2, kind: output, shape index: {}]  }
   0x1   :  { %9 = vsyncpa [#allocation3 + $0x1], 0 }
   0x2   :  { %10 = vsyncpa [#allocation6], 0 }
   0x3   :  { %12 = vsyncpa [#allocation6 + $0x1], 0 }
   0x4   :  { %13 = vsyncpa [#allocation4], 0 }
   0x5   :  { %15 = vsyncpa [#allocation4 + $0x1], 0  ;;  %s1105_s9 = smov 0   ;;  %s1107_s10 = smov 0  }
   0x6   :  { %s1109_s11 = smov 0   ;;  %s1111_s12 = smov 0  }
   0x7 LB: > { %s1126_s13 = sadd.s32 4294967295, %s1043_s12   ;;  %s710_s14 = sadd.s32 4294967294, %s1043_s12   ;;  %s1043_s12 = sphi %s1111_s12, %s1751_s12   ;;  %s1039_s11 = sphi %s1109_s11, %s1750_s11   ;;  %s1035_s10 = sphi %s1107_s10, %s1749_s10   ;;  %s1031_s9 = sphi %s1105_s9, %s1748_s9  }
   0x8   : > { %s1130_s15 = sadd.s32 1, %s1043_s12   ;;  %s28_s16 = sadd.s32 1, %s1039_s11 }
   0x9   : > { %s25_s17 = ssub.s32 %s1043_s12, %s1130_s15  ;;  %p35_p0 = scmp.ne.s32.totalorder %s1039_s11, %s1035_s10 }
   0xa   : > { %p26_p1 = scmp.eq.s32.totalorder %s25_s17, 0  ;;  %p36_p2 = scmp.eq.s32.totalorder %s1043_s12, 0 }
   0xb   : > { %p41_p3 = scmp.ne.s32.totalorder %s1035_s10, %s1031_s9  ;;  %p42_p4 = scmp.eq.s32.totalorder %s1126_s13, 0 }
   0xc   : > { %s1142_s18 = scalar_select %p26_p1, %s1039_s11, %s28_s16  }
   0xd   : > { %p1144_p5 = por %p36_p2, %p35_p0  ;;  %p1148_p6 = por %p42_p4, %p41_p3 }
   0xe   : > { %p91_p7 = scmp.eq.s32.totalorder %s1126_s13, 1  ;;  %p97_p8 = scmp.eq.s32.totalorder %s710_s14, 1 }
   0xf   : > { %s1668_s19 = scalar_select %p1144_p5, 1, 0 }
  0x10   : > { %s1669_s20 = scalar_select %p1148_p6, 1, 0 }
  0x11   : > { %p1153_p9 = por %p91_p7, %p35_p0  ;;  %p1157_p10 = por %p97_p8, %p41_p3 }
  0x12   : > { %p1664_p11 = scmp.ge.s32.totalorder %s1043_s12, 2 }
  0x13   : > { %s1670_s21 = scalar_select %p1153_p9, 1, 0 }
  0x14   : > { %s1671_s22 = scalar_select %p1157_p10, 1, 0 }
  0x15   : > { %113 = sbr.rel (%p1664_p11) target bundleno = 98 (0x62), region = 16 }
  0x1c   : > { %116 = sbr.rel (!%p1144_p5) target bundleno = 62 (0x3e), region = 20  ;;  %s117_s23 = sand.u32 (%p1144_p5), 1, %s1039_s11  }
  0x1d   : > { %s122_s24 = smul.u32 (%p1144_p5), 54, %s1043_s12  ;;  %s1171_s29 = scalar_lea.sflag (%p1144_p5), [#allocation3], %s117_s23 }
  0x1e   : > { %s727_s25 = smul.u32 (%p1144_p5), 54, %s117_s23 }
  0x1f   : > { %s123_s26 = ssub.s32 (%p1144_p5), 96, %s122_s24 }
  0x20   : > { %p124_p12 = scmp.lt.s32.totalorder (%p1144_p5), %s123_s26, 54  ;;  %s121_s30 = scalar_lea.vmem (%p1144_p5), [#allocation2], %s727_s25 }
  0x23   : > { %s1753_s26 = smov (!%p124_p12, %s123_s26), 54 }
  0x24   : > { %s1168_s27 = sshll.u32 %s1753_s26, 4 }
  0x25   : > { %s128_s28 = ssub.s32 864, %s1168_s27 }
  0x26   : > { %129 = vsyncadd %s1171_s29, %s128_s28  ;;  %p714_p13 = scmp.ne.s32.totalorder %s1168_s27, 0  ;;  %s725_s3 = smul.u32 864, %s1043_s12 }
  0x27   : > { %s134_s4 = sshll.u32 %s121_s30, 4  ;;  %s881_s17 = scalar_lea.hbm %s1661_s0, 1536  ;;  %s135_s4 = int_to_ptr.vmem [resolvable:$true] %s134_s4 }
  0x28   : > { %s1179_s7 = scalar_lea.hbm %s1661_s0, %s725_s3 }
  0x29   : > { %s877_s8 = scalar_lea.hbm %s1179_s7, %s1168_s27  ;;  %p882_p3 = scmp.lt.u32.totalorder %s1179_s7, %s1661_s0 }
  0x2a   : > { %p878_p0 = scmp.ne.s32.totalorder %s1179_s7, %s877_s8  ;;  %p883_p4 = scmp.lt.u32.totalorder %s881_s17, %s877_s8 }
  0x2b   : > { %p885_p8 = scmp.lt.u32.totalorder %s877_s8, %s1179_s7 }
  0x2c   : > { %p879_p1 = pnand %p878_p0, %p714_p13  ;;  %p884_p7 = por %p883_p4, %p882_p3 }
  0x2e   : > { %p880_p2 = pneg %p879_p1  ;;  %p886_p12 = por %p885_p8, %p884_p7 }
  0x30   : > { %p887_p11 = pnand %p886_p12, %p880_p2 }
  0x32   : > { %890 = shalt.err (!%p887_p11)
}
  0x33   : > { %s891_s25 = scalar_lea.vmem %s135_s4, %s1168_s27  ;;  %s1085_s26 = smov [#allocation2]  }
  0x34   : > { %p892_p10 = scmp.ne.s32.totalorder %s135_s4, %s891_s25  ;;  %s895_s28 = sshll.u32 %s1085_s26, 4  ;;  %s896_s28 = int_to_ptr.vmem [resolvable:$false] %s895_s28 }
  0x35   : > { %s897_s30 = scalar_lea.vmem %s896_s28, 1728  ;;  %p898_p9 = scmp.lt.s32.totalorder %s135_s4, %s896_s28 }
  0x36   : > { %p893_p0 = pnand %p892_p10, %p714_p13  ;;  %p899_p6 = scmp.lt.s32.totalorder %s897_s30, %s891_s25 }
  0x38   : > { %p894_p1 = pneg %p893_p0  ;;  %p900_p5 = por %p899_p6, %p898_p9 }
  0x3a   : > { %p901_p3 = pnand %p900_p5, %p894_p1 }
  0x3c   : > { %904 = shalt.err (!%p901_p3)
}
  0x3d   : > { %137 = dma.hbm_to_vmem [thread:$0]  (%p714_p13), %s1179_s7, %s1168_s27, %s135_s4, %s1171_s29  }
  0x3e PF: > { %p1672_p11 = scmp.ne.s32.totalorder %s1668_s19, 0 }
  0x3f   : > { %s141_s3 = sand.u32 (%p1672_p11), 1, %s1039_s11   ;;  %s146_s5 = smul.u32 (%p1672_p11), 54, %s1043_s12 }
  0x40   : > { %140 = sbr.rel (!%p1672_p11) target bundleno = 98 (0x62), region = 24  ;;  %s1209_s17 = scalar_lea.sflag (%p1672_p11), [#allocation6], %s141_s3 }
  0x41   : > { %s728_s6 = smul.u32 (%p1672_p11), 54, %s141_s3  ;;  %s147_s8 = ssub.s32 (%p1672_p11), 96, %s146_s5 }
  0x42   : > { %p148_p10 = scmp.lt.s32.totalorder (%p1672_p11), %s147_s8, 54 }
  0x43   : > { %s145_s27 = scalar_lea.vmem (%p1672_p11), [#allocation5], %s728_s6 }
  0x47   : > { %s1755_s8 = smov (!%p148_p10, %s147_s8), 54 }
  0x48   : > { %s1206_s14 = sshll.u32 %s1755_s8, 4 }
  0x49   : > { %s152_s16 = ssub.s32 864, %s1206_s14 }
  0x4a   : > { %153 = vsyncadd %s1209_s17, %s152_s16  ;;  %p717_p5 = scmp.ne.s32.totalorder %s1206_s14, 0  ;;  %s726_s19 = smul.u32 864, %s1043_s12 }
  0x4b   : > { %s158_s29 = sshll.u32 %s145_s27, 4  ;;  %s909_s28 = scalar_lea.hbm %s1662_s1, 1536  ;;  %s159_s29 = int_to_ptr.vmem [resolvable:$true] %s158_s29 }
  0x4c   : > { %s1217_s23 = scalar_lea.hbm %s1662_s1, %s726_s19 }
  0x4d   : > { %s905_s24 = scalar_lea.hbm %s1217_s23, %s1206_s14  ;;  %p910_p2 = scmp.lt.u32.totalorder %s1217_s23, %s1662_s1 }
  0x4e   : > { %p906_p6 = scmp.ne.s32.totalorder %s1217_s23, %s905_s24  ;;  %p911_p4 = scmp.lt.u32.totalorder %s909_s28, %s905_s24 }
  0x4f   : > { %p913_p8 = scmp.lt.u32.totalorder %s905_s24, %s1217_s23 }
  0x50   : > { %p907_p9 = pnand %p906_p6, %p717_p5  ;;  %p912_p7 = por %p911_p4, %p910_p2 }
  0x52   : > { %p908_p13 = pneg %p907_p9  ;;  %p914_p12 = por %p913_p8, %p912_p7 }
  0x54   : > { %p915_p0 = pnand %p914_p12, %p908_p13 }
  0x56   : > { %918 = shalt.err (!%p915_p0)
}
  0x57   : > { %s919_s5 = scalar_lea.vmem %s159_s29, %s1206_s14  ;;  %s1086_s6 = smov [#allocation5]  }
  0x58   : > { %p920_p1 = scmp.ne.s32.totalorder %s159_s29, %s919_s5  ;;  %s923_s8 = sshll.u32 %s1086_s6, 4  ;;  %s924_s8 = int_to_ptr.vmem [resolvable:$false] %s923_s8 }
  0x59   : > { %s925_s16 = scalar_lea.vmem %s924_s8, 1728  ;;  %p926_p10 = scmp.lt.s32.totalorder %s159_s29, %s924_s8 }
  0x5a   : > { %p921_p3 = pnand %p920_p1, %p717_p5  ;;  %p927_p6 = scmp.lt.s32.totalorder %s925_s16, %s919_s5 }
  0x5c   : > { %p922_p11 = pneg %p921_p3  ;;  %p928_p9 = por %p927_p6, %p926_p10 }
  0x5e   : > { %p929_p2 = pnand %p928_p9, %p922_p11 }
  0x60   : > { %932 = shalt.err (!%p929_p2)
}
  0x61   : > { %161 = dma.hbm_to_vmem [thread:$0]  (%p717_p5), %s1217_s23, %s1206_s14, %s159_s29, %s1209_s17  }
  0x62 PF: > { %p719_p13 = scmp.ge.s32.totalorder %s1043_s12, 1  ;;  %p163_p4 = scmp.lt.s32.totalorder %s1043_s12, 3 }
  0x64   : > { %p164_p7 = pnand %p719_p13, %p163_p4 }
  0x65   : > { %s1243_s27 = sand.u32 (!%p164_p7), 1, %s1035_s10   ;;  %p1673_p8 = scmp.ne.s32.totalorder (!%p164_p7), %s1669_s20, 0 }
  0x66   : > { %167 = sbr.rel (%p164_p7) target bundleno = 544 (0x220), region = 28  ;;  %s170_s4 = scalar_lea.sflag (!%p164_p7), [#allocation3], %s1243_s27 }
  0x67   : > { %s729_s19 = smul.u32 (!%p164_p7), 54, %s1243_s27 }
  0x69   : > { %s1247_s7 = scalar_lea.vmem (!%p164_p7), [#allocation2], %s729_s19 }
  0x6d   : > { %1018 = dma.done.wait (%p1673_p8), %s170_s4, 864  }
  0x6e   : > { %1020 = vsyncadd (%p1673_p8), %s170_s4, 4294966432  ;;  %s179_s14 = scalar_lea.sflag [#allocation6], %s1243_s27  ;;  %s1254_s17 = scalar_lea.vmem [#allocation5], %s729_s19 }
  0x6f   : > { %1022 = dma.done.wait (%p1673_p8), %s179_s14, 864  }
  0x70   : > { %1024 = vsyncadd (%p1673_p8), %s179_s14, 4294966432  ;;  %s720_s29 = sshll.u32 %s1243_s27, 3  ;;  %s218_s23 = smul.u32 6912, %s1126_s13  ;;  %v220_v0 = vlaneseq }
  0x71   : > { %s1427_s20 = scalar_lea.vmem [#allocation7], %s720_s29  ;;  %s1447_s25 = smov 0  }
  0x72   : > { %s1262_s24 = ssub.s32 12288, %s218_s23  ;;  %v1265_v1 = vand.u32 127, %v220_v0 }
  0x74   : > { %v1268_v2 = vadd.s32 128, %v1265_v1  ;;  %v1271_v3 = vadd.s32 256, %v1265_v1  ;;  %v1274_v4 = vadd.s32 384, %v1265_v1  ;;  %v1277_v5 = vadd.s32 512, %v1265_v1 }
  0x75   : > { %v1280_v6 = vadd.s32 640, %v1265_v1  ;;  %v1283_v7 = vadd.s32 768, %v1265_v1  ;;  %v1286_v8 = vadd.s32 896, %v1265_v1  ;;  %v1289_v9 = vadd.s32 1024, %v1265_v1 }
  0x76   : > { %v1292_v10 = vmul.u32.u64.low 2863311531, %v1265_v1  ;;  %v1293_v11 = vmul.u32.u64.high 2863311531, %v1265_v1, %v1292_v10  ;;  %v1296_v12 = vmul.u32.u64.low 2863311531, %v1268_v2  ;;  %v1297_v13 = vmul.u32.u64.high 2863311531, %v1268_v2, %v1296_v12 }
  0x77   : > { %v1300_v14 = vmul.u32.u64.low 2863311531, %v1271_v3  ;;  %v1301_v15 = vmul.u32.u64.high 2863311531, %v1271_v3, %v1300_v14  ;;  %v1304_v16 = vmul.u32.u64.low 2863311531, %v1274_v4  ;;  %v1305_v17 = vmul.u32.u64.high 2863311531, %v1274_v4, %v1304_v16 }
  0x78   : > { %v1308_v18 = vmul.u32.u64.low 2863311531, %v1277_v5  ;;  %v1309_v19 = vmul.u32.u64.high 2863311531, %v1277_v5, %v1308_v18  ;;  %v1312_v20 = vmul.u32.u64.low 2863311531, %v1280_v6  ;;  %v1313_v21 = vmul.u32.u64.high 2863311531, %v1280_v6, %v1312_v20 }
  0x79   : > { %v1316_v22 = vmul.u32.u64.low 2863311531, %v1283_v7  ;;  %v1317_v23 = vmul.u32.u64.high 2863311531, %v1283_v7, %v1316_v22  ;;  %v1320_v24 = vmul.u32.u64.low 2863311531, %v1286_v8  ;;  %v1321_v25 = vmul.u32.u64.high 2863311531, %v1286_v8, %v1320_v24 }
  0x7a   : > { %v236_v26 = vshrl.u32 %v1293_v11, 1  ;;  %v247_v27 = vshrl.u32 %v1297_v13, 1  ;;  %v1326_v28 = vmul.u32.u64.low 2863311531, %v1289_v9  ;;  %v1327_v29 = vmul.u32.u64.high 2863311531, %v1289_v9, %v1326_v28 }
  0x7b   : > { %v258_v30 = vshrl.u32 %v1301_v15, 1  ;;  %v269_v31 = vshrl.u32 %v1305_v17, 1  ;;  %v280_v34 = vshrl.u32 %v1309_v19, 1  ;;  %v291_v35 = vshrl.u32 %v1313_v21, 1 }
  0x7c   : > { %v237_v32 = vmul.u32 3, %v236_v26  ;;  %v248_v33 = vmul.u32 3, %v247_v27  ;;  %v302_v38 = vshrl.u32 %v1317_v23, 1  ;;  %v313_v39 = vshrl.u32 %v1321_v25, 1 }
  0x7d   : > { %v259_v36 = vmul.u32 3, %v258_v30  ;;  %v270_v37 = vmul.u32 3, %v269_v31  ;;  %v324_v50 = vshrl.u32 %v1327_v29, 1  ;;  %v1688_v20 = vmov 0 }
  0x7e   : > { %v238_v40 = vsub.s32 %v1265_v1, %v237_v32  ;;  %v249_v41 = vsub.s32 %v1268_v2, %v248_v33  ;;  %v281_v42 = vmul.u32 3, %v280_v34  ;;  %v292_v43 = vmul.u32 3, %v291_v35 }
  0x7f   : > { %v260_v44 = vsub.s32 %v1271_v3, %v259_v36  ;;  %v271_v45 = vsub.s32 %v1274_v4, %v270_v37  ;;  %v303_v46 = vmul.u32 3, %v302_v38  ;;  %v314_v47 = vmul.u32 3, %v313_v39 }
  0x80   : > { %v282_v48 = vsub.s32 %v1277_v5, %v281_v42  ;;  %v293_v49 = vsub.s32 %v1280_v6, %v292_v43  ;;  %vm329_vm0 = vcmp.ne.s32.totalorder %v238_v40, 0  ;;  %vm330_vm1 = vcmp.ne.s32.totalorder %v249_v41, 0 }
  0x81   : > { %v304_v51 = vsub.s32 %v1283_v7, %v303_v46  ;;  %v315_v52 = vsub.s32 %v1286_v8, %v314_v47  ;;  %v325_v53 = vmul.u32 3, %v324_v50  ;;  %vm338_vm8 = vcmp.lt.s32.totalorder %v238_v40, 0 }
  0x82   : > { %vm339_vm9 = vcmp.lt.s32.totalorder %v249_v41, 0  ;;  %vm340_vm10 = vcmp.lt.s32.totalorder %v260_v44, 0  ;;  %vm341_vm11 = vcmp.lt.s32.totalorder %v271_v45, 0  ;;  %vm342_vm12 = vcmp.lt.s32.totalorder %v282_v48, 0  ;;  %vm1346_vm13 = vmand %vm338_vm8, %vm329_vm0 }
  0x83   : > { %v326_v54 = vsub.s32 %v1289_v9, %v325_v53  ;;  %vm343_vm14 = vcmp.lt.s32.totalorder %v293_v49, 0  ;;  %vm344_vm15 = vcmp.lt.s32.totalorder %v304_v51, 0  ;;  %vm345_vm2 = vcmp.lt.s32.totalorder %v315_v52, 0  ;;  %vm1351_vm4 = vmand %vm339_vm9, %vm330_vm1 }
  0x84   : > { %v356_v57 = vadd.s32 3, %v238_v40  ;;  %vm1678_vm5 = vcmp.ne.s32.totalorder %v260_v44, 0  ;;  %v357_v59 = vadd.s32 3, %v249_v41  ;;  %v358_v60 = vadd.s32 3, %v260_v44 }
  0x85   : > { %vm337_vm7 = vcmp.ne.s32.totalorder %v326_v54, 0  ;;  %vm346_vm6 = vcmp.lt.s32.totalorder %v326_v54, 0  ;;  %vm1356_vm3 = vmand %vm340_vm10, %vm1678_vm5  ;;  %vm1681_vm0 = vcmp.ne.s32.totalorder %v271_v45, 0  ;;  %v359_v62 = vadd.s32 3, %v271_v45 }
  0x86   : > { %vm1361_vm8 = vmand %vm341_vm11, %vm1681_vm0  ;;  %v360_v63 = vadd.s32 3, %v282_v48  ;;  %v361_v10 = vadd.s32 3, %v293_v49  ;;  %v362_v11 = vadd.s32 3, %v304_v51  ;;  %vm1684_vm1 = vcmp.ne.s32.totalorder %v282_v48, 0 }
  0x87   : > { %vm1367_vm9 = vmand %vm342_vm12, %vm1684_vm1  ;;  %v363_v13 = vadd.s32 3, %v315_v52  ;;  %v364_v14 = vadd.s32 3, %v326_v54  ;;  %v365_v15 = vsel %vm1346_vm13, %v356_v57, %v238_v40  ;;  %v366_v16 = vsel %vm1351_vm4, %v357_v59, %v249_v41 }
  0x88   : > { %vm1687_vm5 = vcmp.ne.s32.totalorder %v293_v49, 0  ;;  %v367_v17 = vsel %vm1356_vm3, %v358_v60, %v260_v44  ;;  %v368_v18 = vsel %vm1361_vm8, %v359_v62, %v271_v45  ;;  %v369_v19 = vsel %vm1367_vm9, %v360_v63, %v282_v48  ;;  %vm355_vm9 = vmand %vm346_vm6, %vm337_vm7 }
  0x89   : > { %vm352_vm10 = vmand %vm343_vm14, %vm1687_vm5  ;;  %vm1383_vm11 = vcmp.eq.s32.totalorder %v365_v15, 0  ;;  %vm1690_vm12 = vcmp.ne.s32.totalorder %v304_v51, 0  ;;  %vm1389_vm13 = vcmp.eq.s32.totalorder %v366_v16, 0  ;;  %v1691_v22 = vmov 0 }
  0x8a   : > { %v1689_v20 = vsel %vm1383_vm11, 4294967295, %v1688_v20  ;;  %vm353_vm4 = vmand %vm344_vm15, %vm1690_vm12  ;;  %v370_v21 = vsel %vm352_vm10, %v361_v10, %v293_v49  ;;  %v1692_v22 = vsel %vm1389_vm13, 4294967295, %v1691_v22  ;;  %vm1393_vm3 = vcmp.eq.s32.totalorder %v367_v17, 0 }
  0x8b   : > { %v1693_v23 = vmov 0  ;;  %vm1397_vm14 = vcmp.eq.s32.totalorder %v368_v18, 0  ;;  %v1695_v24 = vmov 0  ;;  %vm1697_vm0 = vcmp.ne.s32.totalorder %v315_v52, 0 }
  0x8c   : > { %v1694_v23 = vsel %vm1393_vm3, 4294967295, %v1693_v23  ;;  %v1696_v24 = vsel %vm1397_vm14, 4294967295, %v1695_v24  ;;  %vm354_vm8 = vmand %vm345_vm2, %vm1697_vm0  ;;  %v371_v25 = vsel %vm353_vm4, %v362_v11, %v304_v51  ;;  %vm1403_vm1 = vcmp.eq.s32.totalorder %v369_v19, 0 }
  0x8d   : > { %v1698_v26 = vmov 0  ;;  %vm1407_vm15 = vcmp.eq.s32.totalorder %v370_v21, 0  ;;  %v372_v28 = vsel %vm354_vm8, %v363_v13, %v315_v52  ;;  %vm1413_vm5 = vcmp.eq.s32.totalorder %v371_v25, 0 }
  0x8e   : > { %v1699_v26 = vsel %vm1403_vm1, 4294967295, %v1698_v26  ;;  %v1702_v29 = vmov 0  ;;  %v373_v30 = vsel %vm355_vm9, %v364_v14, %v326_v54  ;;  %vm1417_vm10 = vcmp.eq.s32.totalorder %v372_v28, 0 }
  0x8f   : > { %v1703_v29 = vsel %vm1413_vm5, 4294967295, %v1702_v29  ;;  %v1704_v31 = vmov 0  ;;  %vm1421_vm2 = vcmp.eq.s32.totalorder %v373_v30, 0  ;;  %v1706_v32 = vmov 0 }
  0x90   : > { %v1705_v31 = vsel %vm1417_vm10, 4294967295, %v1704_v31  ;;  %v1707_v32 = vsel %vm1421_vm2, 4294967295, %v1706_v32  ;;  %v1429_v33 = vmov 0.0   ;;  %v1431_v34 = vmov 0.0  }
  0x91   : > { %v1433_v35 = vmov 0.0   ;;  %v1435_v36 = vmov 0.0   ;;  %v1437_v37 = vmov 0.0   ;;  %v1439_v38 = vmov 0.0  }
  0x92   : > { %v1441_v39 = vmov 0.0   ;;  %v1443_v40 = vmov 0.0   ;;  %v1445_v41 = vmov 0.0  }
  0x93 LB: >> { %s398_s26 = smul.u32 1152, %s1083_s25  ;;  %s1087_s5 = smov 126   ;;  %vm419_vm6 = vcmask 1046528   ;;  %vm421_vm7 = vcmask 1039360   ;;  %vm434_vm12 = vcmask 1031168   ;;  %v477_v12 = vshrl.u32 %v220_v0, 7  ;;  %s1083_s25 = sphi %s1447_s25, %s388_s25   ;;  %v1079_v41 = vphi %v1445_v41, %v1744_v41   ;;  %v1075_v40 = vphi %v1443_v40, %v1743_v40   ;;  %v1071_v39 = vphi %v1441_v39, %v1742_v39   ;;  %v1067_v38 = vphi %v1439_v38, %v1741_v38   ;;  %v1063_v37 = vphi %v1437_v37, %v1740_v37   ;;  %v1059_v36 = vphi %v1435_v36, %v1739_v36   ;;  %v1055_v35 = vphi %v1433_v35, %v1738_v35   ;;  %v1051_v34 = vphi %v1431_v34, %v1737_v34   ;;  %v1047_v33 = vphi %v1429_v33, %v1736_v33  }
  0x94   : >> { %s1088_s6 = smov 127   ;;  %vm1708_vm13 = vnez %v1692_v22  ;;  %vm1711_vm3 = vnez %v1694_v23  ;;  %vm1714_vm14 = vnez %v1696_v24  ;;  %vm1717_vm2 = vnez %v1707_v32  ;;  %s388_s25 = sadd.s32 1, %s1083_s25  }
  0x95   : >> { %s399_s28 = sshra.s32 %s398_s26, 7  ;;  %s454_s8 = ssub.s32 %s1262_s24, %s398_s26  ;;  %v478_v14 = vsub.s32 0, %v477_v12  ;;  %v482_v15 = vsub.s32 1, %v477_v12  ;;  %v486_v16 = vsub.s32 2, %v477_v12  ;;  %v490_v18 = vsub.s32 3, %v477_v12 }
  0x96   : >> { %s401_s30 = scalar_lea.vmem %s1247_s7, %s399_s28 [#allocation2]  ;;  %s404_s3 = scalar_lea.vmem %s1254_s17, %s399_s28 [#allocation5]  ;;  %v455_v13 = vstv %s454_s8  ;;  %v494_v19 = vsub.s32 4, %v477_v12  ;;  %v498_v21 = vsub.s32 5, %v477_v12  ;;  %v502_v25 = vsub.s32 6, %v477_v12 }
  0x97   : >> { %v402_v42 = vld [vmem:[%s401_s30] sm:$0xff]  ;;  %v403_v44 = vld [vmem:[%s401_s30 + $0x8] sm:$0x1]  ;;  %vm457_vm4 = vcmp.lt.s32.totalorder %v1268_v2, %v455_v13  ;;  %vm458_vm0 = vcmp.lt.s32.totalorder %v1271_v3, %v455_v13  ;;  %vm459_vm8 = vcmp.lt.s32.totalorder %v1274_v4, %v455_v13  ;;  %vm460_vm9 = vcmp.lt.s32.totalorder %v1277_v5, %v455_v13  ;;  %p385_p5 = scmp.ge.s32.totalorder %s388_s25, 6  }
  0x98   : >> { %v405_v43 = vld [vmem:[%s404_s3] sm:$0xff]  ;;  %v406_v46 = vld [vmem:[%s404_s3 + $0x8] sm:$0x1]  ;;  %vm464_vm11 = vcmp.lt.s32.totalorder %v1289_v9, %v455_v13  ;;  %v506_v30 = vsub.s32 7, %v477_v12  ;;  %vm1718_vm1 = vnez %v1699_v26  ;;  %vm1725_vm5 = vnez %v1703_v29  ;;  %s722_s16 = sshll.u32 (%p385_p5), %s1126_s13, 7  ;;  %s583_s19 = sshll.u32 (%p385_p5), %s1427_s20, 4  ;;  %s1618_s19 = int_to_ptr.vmem [resolvable:$true] %s583_s19 }
  0x99   : >> { %v407_v45 = vsub.f32 %v402_v42, %v405_v43  ;;  %v408_v47 = vsub.f32 %v403_v44, %v406_v46  ;;  %s1616_s14 = scalar_lea.hbm (%p385_p5), %s1663_s2, %s722_s16  ;;  %s570_s29 = scalar_lea.sflag (%p385_p5), [#allocation4], %s1243_s27 }
  0x9a   : > { %s933_s23 = scalar_lea.vmem (%p385_p5), %s1618_s19, 128  ;;  %p1745_p0 = scmp.ne.s32.totalorder (%p385_p5), %s1670_s21, 0 }
  0x9b   : >> { %v409_v48 = vmul.f32 %v407_v45, %v407_v45  ;;  %v410_v49 = vmul.f32 %v408_v47, %v408_v47  ;;  %p934_p12 = scmp.ne.s32.totalorder (%p385_p5), %s1618_s19, %s933_s23  ;;  %s1089_s13 = smov (%p385_p5), [#allocation7]  }
  0x9c   : > { %s937_s24 = sshll.u32 (%p385_p5), %s1089_s13, 4  ;;  %s938_s24 = int_to_ptr.vmem [resolvable:$false] %s937_s24 }
  0x9d   : >> { %427 = vrot.lane.b32.xlu1 %v409_v48, %s1087_s5  ;;  %413 = vrot.lane.b32.xlu0 %v409_v48, %s1088_s6  ;;  %p935_p1 = pnand (%p385_p5), %p934_p12, %p1745_p0  ;;  %s939_s25 = scalar_lea.vmem (%p385_p5), %s938_s24, 256 }
  0x9e   : > { %p940_p11 = scmp.lt.s32.totalorder (%p385_p5), %s1618_s19, %s938_s24  ;;  %p941_p10 = scmp.lt.s32.totalorder (%p385_p5), %s939_s25, %s933_s23 }
  0x9f   : > { %p936_p3 = pneg (%p385_p5), %p935_p1 }
  0xa0   : > { %p942_p6 = por (%p385_p5), %p941_p10, %p940_p11 }
  0xa1   : >> { %429 = vrot.lane.b32.xlu1 %v410_v49, %s1087_s5  ;;  %415 = vrot.lane.b32.xlu0 %v410_v49, %s1088_s6 }
  0xa2   : > { %p943_p9 = pnand (%p385_p5), %p942_p6, %p936_p3 }
 0x10f   : >> { %v428_v50 = vpop.permute.xlu1 %427  ;;  %v414_v51 = vpop.permute.xlu0 %413 }
 0x110   : >> { %v431_v52 = vrot.slane %v428_v50, 1  ;;  %v417_v55 = vrot.slane %v414_v51, 1 }
 0x113   : >> { %v430_v53 = vpop.permute.xlu1 %429  ;;  %v416_v54 = vpop.permute.xlu0 %415 }
 0x114   : >> { %v432_v56 = vrot.slane %v430_v53, 1  ;;  %v418_v57 = vrot.slane %v416_v54, 1  ;;  %v426_v58 = vadd.f32 %v416_v54, %v410_v49 }
 0x116   : >> { %v433_v59 = vsel %vm419_vm6, %v431_v52, %v432_v56  ;;  %v420_v60 = vsel %vm419_vm6, %v417_v55, %v418_v57  ;;  %v439_v61 = vadd.f32 %v430_v53, %v426_v58  ;;  %vm1501_vm6 = vmand %vm1708_vm13, %vm457_vm4 }
 0x117   : >> { %v422_v62 = vsel %vm421_vm7, %v414_v51, %v420_v60  ;;  %v435_v10 = vsel %vm434_vm12, %v428_v50, %v433_v59  ;;  %vm1509_vm12 = vmand %vm1711_vm3, %vm458_vm0 }
 0x118   : >> { %v425_v63 = vadd.f32 %v422_v62, %v409_v48  ;;  %873 = vrsqrt.f32 %v439_v61  ;;  %vm449_vm10 = vcmp.eq.f32.partialorder %v439_v61, inf  ;;  %v452_v44 = vand.u32 2147483648, %v439_v61  ;;  %vm1517_vm4 = vmand %vm1714_vm14, %vm459_vm8 }
 0x119   : >> { %vm451_vm7 = vcmp.eq.f32.partialorder %v439_v61, 0.0  ;;  %vm473_vm0 = vmand %vm1717_vm2, %vm464_vm11  ;;  %vm1728_vm2 = vcmp.lt.s32.totalorder %v1265_v1, %v455_v13  ;;  %vm1732_vm14 = vcmp.lt.s32.totalorder %v1286_v8, %v455_v13 }
 0x11a   : >> { %v438_v11 = vadd.f32 %v435_v10, %v425_v63  ;;  %vm1529_vm3 = vmand %vm1718_vm1, %vm460_vm9 }
 0x11c   : >> { %875 = vrsqrt.f32 %v438_v11  ;;  %vm442_vm11 = vcmp.eq.f32.partialorder %v438_v11, inf  ;;  %v445_v53 = vand.u32 2147483648, %v438_v11  ;;  %vm444_vm1 = vcmp.eq.f32.partialorder %v438_v11, 0.0 }
 0x122   : >> { %v874_v17 = vpop.eup %873 }
 0x123   : >> { %v448_v42 = vmul.f32 %v874_v17, %v439_v61 }
 0x125   : >> { %v450_v46 = vsel %vm449_vm10, %v439_v61, %v448_v42  ;;  %vm1721_vm10 = vcmp.lt.s32.totalorder %v1280_v6, %v455_v13 }
 0x126   : >> { %v876_v47 = vpop.eup %875  ;;  %v453_v48 = vsel %vm451_vm7, %v452_v44, %v450_v46  ;;  %vm1537_vm8 = vmand %vm1407_vm15, %vm1721_vm10  ;;  %vm1724_vm7 = vcmp.lt.s32.totalorder %v1283_v7, %v455_v13  ;;  %vm1729_vm10 = vnez %v1689_v20 }
 0x127   : >> { %v441_v50 = vmul.f32 %v876_v47, %v438_v11  ;;  %v511_v51 = vrot.slane %v453_v48, %v478_v14  ;;  %vm1545_vm9 = vmand %vm1725_vm5, %vm1724_vm7  ;;  %vm1733_vm7 = vnez %v1705_v31 }
 0x128   : >> { %vm1553_vm13 = vmand %vm1729_vm10, %vm1728_vm2 }
 0x129   : >> { %v443_v55 = vsel %vm442_vm11, %v438_v11, %v441_v50  ;;  %v529_v56 = vsel %vm473_vm0, %v511_v51, 0.0  ;;  %vm1562_vm5 = vmand %vm1733_vm7, %vm1732_vm14 }
 0x12a   : >> { %v446_v58 = vsel %vm444_vm1, %v445_v53, %v443_v55  ;;  %v538_v59 = vadd.f32 %v1047_v33, %v529_v56  }
 0x12b   : >> { %v479_v61 = vrot.slane %v446_v58, %v478_v14  ;;  %v483_v62 = vrot.slane %v446_v58, %v482_v15  ;;  %v487_v63 = vrot.slane %v446_v58, %v486_v16  ;;  %v491_v10 = vrot.slane %v446_v58, %v490_v18 }
 0x12c   : >> { %v495_v11 = vrot.slane %v446_v58, %v494_v19  ;;  %v499_v12 = vrot.slane %v446_v58, %v498_v21  ;;  %v503_v17 = vrot.slane %v446_v58, %v502_v25  ;;  %v507_v42 = vrot.slane %v446_v58, %v506_v30 }
 0x12d   : >> { %v521_v44 = vsel %vm1553_vm13, %v479_v61, 0.0  ;;  %v522_v33 = vsel %vm1501_vm6, %v483_v62, 0.0  ;;  %v523_v13 = vsel %vm1509_vm12, %v487_v63, 0.0  ;;  %v524_v46 = vsel %vm1517_vm4, %v491_v10, 0.0  ;;  %387 = sbr.rel (!%p385_p5) target bundleno = 147 (0x93), region = 95 }
 0x12e   : >> { %v525_v14 = vsel %vm1529_vm3, %v495_v11, 0.0  ;;  %v526_v15 = vsel %vm1537_vm8, %v499_v12, 0.0  ;;  %v527_v16 = vsel %vm1545_vm9, %v503_v17, 0.0  ;;  %v528_v18 = vsel %vm1562_vm5, %v507_v42, 0.0 }
 0x12f   : >> { %v530_v19 = vadd.f32 %v1079_v41, %v521_v44   ;;  %v531_v21 = vadd.f32 %v1075_v40, %v522_v33   ;;  %v532_v25 = vadd.f32 %v1071_v39, %v523_v13   ;;  %v533_v28 = vadd.f32 %v1067_v38, %v524_v46  }
 0x130   : >> { %v534_v30 = vadd.f32 %v1063_v37, %v525_v14   ;;  %v535_v43 = vadd.f32 %v1059_v36, %v526_v15   ;;  %v536_v45 = vadd.f32 %v1055_v35, %v527_v16   ;;  %v537_v47 = vadd.f32 %v1051_v34, %v528_v18  }
 0x131   : >> { %v1736_v33 = vmov %v538_v59  ;;  %v1741_v38 = vmov %v533_v28  ;;  %v1742_v39 = vmov %v532_v25  ;;  %v1743_v40 = vmov %v531_v21 }
 0x132   : >> { %v1737_v34 = vmov %v537_v47  ;;  %v1738_v35 = vmov %v536_v45  ;;  %v1739_v36 = vmov %v535_v43  ;;  %v1740_v37 = vmov %v534_v30 }
 0x133   : >> { %v1744_v41 = vmov %v530_v19  ;;  %vm539_vm13 = vcmask (%p385_p5), 1040384   ;;  %vm555_vm3 = vcmask (%p385_p5), 1024000  }
 0x134   : > { %v540_v41 = vsel %vm539_vm13, %v530_v19, 0.0  ;;  %v541_v48 = vsel %vm539_vm13, %v531_v21, 0.0  ;;  %v543_v49 = vsel %vm539_vm13, %v532_v25, 0.0  ;;  %v545_v51 = vsel %vm539_vm13, %v533_v28, 0.0 }
 0x135   : > { %v542_v50 = vadd.f32 %v541_v48, %v540_v41  ;;  %v547_v53 = vsel %vm539_vm13, %v534_v30, 0.0  ;;  %v549_v55 = vsel %vm539_vm13, %v535_v43, 0.0  ;;  %v551_v57 = vsel %vm539_vm13, %v536_v45, 0.0 }
 0x136   : > { %v553_v60 = vsel %vm539_vm13, %v537_v47, 0.0  ;;  %v556_v62 = vsel %vm555_vm3, %v538_v59, 0.0 }
 0x137   : > { %v544_v52 = vadd.f32 %v543_v49, %v542_v50 }
 0x139   : > { %v546_v54 = vadd.f32 %v545_v51, %v544_v52 }
 0x13b   : > { %v548_v56 = vadd.f32 %v547_v53, %v546_v54 }
 0x13d   : > { %v550_v58 = vadd.f32 %v549_v55, %v548_v56 }
 0x13f   : > { %v552_v61 = vadd.f32 %v551_v57, %v550_v58 }
 0x141   : > { %v554_v63 = vadd.f32 %v553_v60, %v552_v61 }
 0x143   : > { %v557_v0 = vadd.f32 %v556_v62, %v554_v63 }
 0x145   : > { %558 = vadd.xlane.f32.xlu0 %v557_v0 }
 0x1d2   : > { %v559_v1 = vpop.xlane.xlu0 %558 }
 0x1d3   : > { %v560_v2 = vrot.slane %v559_v1, 4 }
 0x1d5   : > { %v561_v3 = vadd.f32 %v560_v2, %v559_v1 }
 0x1d7   : > { %v562_v4 = vrot.slane %v561_v3, 2 }
 0x1d9   : > { %v563_v5 = vadd.f32 %v562_v4, %v561_v3 }
 0x1db   : > { %v564_v6 = vrot.slane %v563_v5, 1 }
 0x1dd   : > { %v565_v7 = vadd.f32 %v564_v6, %v563_v5 }
 0x1df   : > { %748 = vpush %v565_v7 }
 0x210   : > { %s749_s17 = spop %748 }
 0x211   : > { %v567_v8 = vstv %s749_s17 }
 0x212   : > { %568 = vst [vmem:[%s1427_s20] sm:$0xff] %v567_v8 }
 0x213   : > { %946 = shalt.err (!%p943_p9)
}
 0x214   : > { %s947_s27 = scalar_lea.hbm %s1616_s14, 128  ;;  %s951_s28 = scalar_lea.hbm %s1663_s2, 256 }
 0x215   : > { %p948_p2 = scmp.ne.s32.totalorder %s1616_s14, %s947_s27  ;;  %p952_p7 = scmp.lt.u32.totalorder %s1616_s14, %s1663_s2 }
 0x216   : > { %p953_p8 = scmp.lt.u32.totalorder %s951_s28, %s947_s27  ;;  %p955_p12 = scmp.lt.u32.totalorder %s947_s27, %s1616_s14 }
 0x217   : > { %p949_p13 = pnand %p948_p2, %p1745_p0 }
 0x218   : > { %p954_p5 = por %p953_p8, %p952_p7 }
 0x219   : > { %p950_p4 = pneg %p949_p13 }
 0x21a   : > { %p956_p1 = por %p955_p12, %p954_p5 }
 0x21c   : > { %p957_p3 = pnand %p956_p1, %p950_p4 }
 0x21e   : > { %960 = shalt.err (!%p957_p3)
}
 0x21f   : > { %752 = dma.vmem_to_hbm [thread:$0]  (%p1745_p0), %s1618_s19, 128, %s1616_s14, %s570_s29  }
 0x220 PF: > { %s595_s5 = sand.u32 1, %s1031_s9   ;;  %p1746_p11 = scmp.ne.s32.totalorder %s1671_s22, 0 }
 0x221   : > { %p1747_p10 = scmp.ge.s32.totalorder %s1043_s12, 2  ;;  %s596_s6 = scalar_lea.sflag [#allocation4], %s595_s5 }
 0x223   : > { %p755_p6 = pnand %p1747_p10, %p1746_p11 }
 0x225   : > { %1026 = dma.done.wait (!%p755_p6), %s596_s6, 128  }
 0x226   : > { %1028 = vsyncadd (!%p755_p6), %s596_s6, 4294967168  ;;  %p18_p9 = scmp.ge.s32.totalorder %s1130_s15, 4   ;;  %s1748_s9 = smov %s1035_s10 }
 0x227   : > { %s1749_s10 = smov %s1039_s11  ;;  %s1750_s11 = smov %s1142_s18 }
 0x228   : > { %s1751_s12 = smov %s1130_s15  ;;  %20 = sbr.rel (!%p18_p9) target bundleno = 7 (0x7), region = 106 }
 0x22f   :  { %601 = vsyncpa [#allocation3], 1 }
 0x230   :  { %603 = vsyncpa [#allocation3 + $0x1], 1 }
 0x231   :  { %604 = vsyncpa [#allocation6], 1 }
 0x232   :  { %606 = vsyncpa [#allocation6 + $0x1], 1 }
 0x233   :  { %607 = vsyncpa [#allocation4], 1 }
 0x234   :  { %609 = vsyncpa [#allocation4 + $0x1], 1 }

</bundles_post_ra>
